<compile_context>
chip_gen: v6e
topology: v6e:2x2x1
jax: 0.10.0
libtpu: 0.0.40
codegen_flags: <defaults>
</compile_context>

<pallas_src>
import functools

import jax
import jax.numpy as jnp
from jax.experimental import pallas as pl
from jax.experimental.pallas import tpu as pltpu


_BN_EPS = 1e-5
_LANE = 128


def _round_up(x, m):
    return (x + m - 1) // m * m


# ---------------------------------------------------------------------------
# Pallas kernel: entire auto-encoder, statically unrolled over layers.
#   x_ref : (TB, Din)    batch tile of the input (natural last dim)
#   w_ref : (L, P, P)    all folded weights (BN scale folded), bf16, zero-padded
#   s_ref : (L, 1, P)    all folded shifts (bias*scale + BN shift), f32
#   d_ref : (TB, P)      decoder output tile (padded lanes)
#   z_ref : (TB, P)      latent output tile (padded lanes)
# ---------------------------------------------------------------------------
def _fused_ae_kernel(x_ref, w_ref, s_ref, d_ref, z_ref, *, acts, z_idx, in_dim):
    h = x_ref[...]                                            # (TB, Din) f32
    for l, act in enumerate(acts):                            # static unroll
        if l == 0:
            # Contract only over the real Din rows of layer 0's weight; this
            # lets x arrive un-lane-padded. Padded rows are exact zeros anyway.
            w = w_ref[0, :in_dim, :]                          # (Din, P) bf16
        else:
            w = w_ref[l]                                      # (P, P) bf16
        # bf16 MXU matmul, f32 accumulation; epilogue stays f32 (v5e-safe).
        y = jnp.dot(h.astype(jnp.bfloat16), w,
                    preferred_element_type=jnp.float32)
        y = y + s_ref[l]                                      # (1, P) broadcast
        if act == "relu":
            y = jnp.maximum(y, 0.0)
        elif act == "tanh":
            y = jnp.tanh(y)                                   # EUP
        elif act == "sigmoid":
            y = jax.nn.sigmoid(y)                             # EUP
        elif act == "none":
            pass
        else:
            raise ValueError(f"unknown act {act}")
        h = y                                                 # (TB, P) f32
        if l == z_idx:                                        # latent output
            z_ref[...] = h.astype(z_ref.dtype)
    d_ref[...] = h.astype(d_ref.dtype)


# ---------------------------------------------------------------------------
# Parameter construction (deterministic, mirrors AutoEncoder.__init__),
# producing packed/padded kernel params (bf16 weights) and raw per-layer
# params for the pure-JAX references.
# ---------------------------------------------------------------------------
def build_autoencoder_params(key, **kwargs):
    in_channels = kwargs["channels"][0]
    act = kwargs["act"]
    z_act = kwargs["z_act"]
    final_act = kwargs["final_act"]
    size = kwargs["max_size"] - kwargs["min_size"]
    min_dim = 32
    hidden_dims = [
        int(in_channels - i * (in_channels - min_dim) / (size - 1)) for i in range(size)
    ]
    hidden_dims.append(kwargs["latent_dim"])

    # Flat layer spec: (din, dout, act) — encoder, z_layer, decoder in order.
    spec = []
    for _ in range(kwargs["l_mult"]):
        spec.append((hidden_dims[0], hidden_dims[0], act))
    for i in range(len(hidden_dims) - 2):
        spec.append((hidden_dims[i], hidden_dims[i + 1], act))
    z_idx = len(spec)
    spec.append((hidden_dims[-2], hidden_dims[-1], z_act))
    hd = list(reversed(hidden_dims))
    if kwargs["l_mult"] > 0:
        for i in range(len(hd) - 1):
            spec.append((hd[i], hd[i + 1], act))
        for _ in range(kwargs["l_mult"] - 1):
            spec.append((hd[-1], hd[-1], act))
        spec.append((hd[-1], hd[-1], final_act))
    else:
        for i in range(len(hd) - 2):
            spec.append((hd[i], hd[i + 1], act))
        spec.append((hd[-2], hd[-1], final_act))

    L = len(spec)
    max_dim = max(max(din, dout) for din, dout, _ in spec)
    P = max(_LANE, _round_up(max_dim, _LANE))

    keys = jax.random.split(key, L)
    # bf16 weight stack with EXACT zero padding (padded rows/cols stay zero so
    # junk in padded activation lanes never feeds the next layer).
    w_stack = jnp.zeros((L, P, P), jnp.bfloat16)
    s_stack = jnp.zeros((L, 1, P), jnp.float32)
    acts = []
    raw_layers = []
    for l, (k, (din, dout, a)) in enumerate(zip(keys, spec)):
        kw, kb = jax.random.split(k)
        w = jax.random.normal(kw, (din, dout), jnp.float32) * (1.0 / jnp.sqrt(din))
        b = jax.random.normal(kb, (1, dout), jnp.float32) * 0.01
        # BatchNorm1d at PyTorch init: gamma=1, beta=0, mean=0, var=1
        gamma = jnp.ones((1, dout), jnp.float32)
        beta = jnp.zeros((1, dout), jnp.float32)
        mean = jnp.zeros((1, dout), jnp.float32)
        var = jnp.ones((1, dout), jnp.float32)
        scale = gamma / jnp.sqrt(var + _BN_EPS)
        shift = beta - mean * scale
        # Fold BN affine + linear bias into the weight / shift.
        w_fold = w * scale                 # broadcast over output columns
        s_fold = b * scale + shift         # (1, dout)
        w_stack = w_stack.at[l, :din, :dout].set(w_fold.astype(jnp.bfloat16))
        s_stack = s_stack.at[l, :, :dout].set(s_fold)
        acts.append(a)
        raw_layers.append(
            dict(w=w, b=b, scale=scale, shift=shift,
                 w_fold=w_fold, s_fold=s_fold, act=a)
        )

    packed = dict(
        w=w_stack,
        s=s_stack,
        acts=tuple(acts),
        z_idx=z_idx,
        P=P,
        in_dim=hidden_dims[0],
        out_dim=hidden_dims[0],          # decoder ends back at the input width
        latent_dim=hidden_dims[-1],
    )
    return packed, raw_layers, hidden_dims


# ---------------------------------------------------------------------------
# Forward pass: one pallas_call for the whole network. Returns PADDED
# (Bp, 128) outputs; slice [:B, :out_dim] / [:B, :latent_dim] if needed.
# ---------------------------------------------------------------------------
def autoencoder_forward(packed, x):
    B, Din = x.shape
    assert Din == packed["in_dim"]
    P = packed["P"]
    L = packed["w"].shape[0]
    acts = packed["acts"]

    # Batch tile: large tiles (up to 512 rows) amortize the ~0.35 us per-grid-
    # step overhead; keep >= 2 grid steps whenever B >= 16 so both v7x
    # TensorCores get work via the "parallel" grid axis.
    if B < 16:
        TB = _round_up(max(B, 8), 8)
    else:
        TB = min(512, _round_up(pl.cdiv(B, 2), 8))
    Bp = _round_up(B, TB)

    # Only the batch dim is padded; the lane dim stays at Din (full array dim,
    # legal block shape), so there is no wrapper-side (Bp, 128) copy of x.
    x_in = x.astype(jnp.float32)
    if Bp != B:
        x_in = jnp.pad(x_in, ((0, Bp - B), (0, 0)))

    n_trans = sum(a in ("tanh", "sigmoid") for a in acts)
    cost = pl.CostEstimate(
        flops=2 * L * Bp * P * P,
        transcendentals=n_trans * Bp * P,
        bytes_accessed=(Bp * Din * 4 + 2 * Bp * P * 4
                        + packed["w"].size * 2 + packed["s"].size * 4),
    )

    kernel = functools.partial(
        _fused_ae_kernel, acts=acts, z_idx=packed["z_idx"], in_dim=Din
    )
    d_pad, z_pad = pl.pallas_call(
        kernel,
        out_shape=(
            jax.ShapeDtypeStruct((Bp, P), jnp.float32),
            jax.ShapeDtypeStruct((Bp, P), jnp.float32),
        ),
        grid=(Bp // TB,),
        in_specs=[
            pl.BlockSpec((TB, Din), lambda i: (i, 0)),        # x batch tile
            pl.BlockSpec((L, P, P), lambda i: (0, 0, 0)),     # all weights, resident
            pl.BlockSpec((L, 1, P), lambda i: (0, 0, 0)),     # all shifts, resident
        ],
        out_specs=(
            pl.BlockSpec((TB, P), lambda i: (i, 0)),          # d (padded lanes)
            pl.BlockSpec((TB, P), lambda i: (i, 0)),          # z (padded lanes)
        ),
        compiler_params=pltpu.CompilerParams(
            dimension_semantics=("parallel",)
        ),
        cost_estimate=cost,
    )(x_in, packed["w"], packed["s"])

    return d_pad, z_pad


# ---------------------------------------------------------------------------
# Pure-JAX references.
#  _ref_forward_f32  : original f32 PyTorch-equivalent semantics.
#  _ref_forward_bf16 : mirrors the kernel's numerics (bf16 dot operands,
#                      f32 accumulation/epilogue) for a tight comparison.
# ---------------------------------------------------------------------------
def _apply_act(y, act):
    if act == "relu":
        return jnp.maximum(y, 0.0)
    if act == "tanh":
        return jnp.tanh(y)
    if act == "sigmoid":
        return jax.nn.sigmoid(y)
    return y


def _ref_forward_f32(raw_layers, z_idx, x):
    h = x
    z = None
    for l, lp in enumerate(raw_layers):
        y = jnp.dot(h, lp["w"], precision="highest") + lp["b"]
        y = y * lp["scale"] + lp["shift"]
        h = _apply_act(y, lp["act"])
        if l == z_idx:
            z = h
    return h, z


def _ref_forward_bf16(raw_layers, z_idx, x):
    h = x
    z = None
    for l, lp in enumerate(raw_layers):
        y = jnp.dot(h.astype(jnp.bfloat16), lp["w_fold"].astype(jnp.bfloat16),
                    preferred_element_type=jnp.float32)
        y = y + lp["s_fold"]
        h = _apply_act(y, lp["act"])
        if l == z_idx:
            z = h
    return h, z


if __name__ == "__main__":
    # kwargs matching the PyTorch module (small, synthetic):
    #   channels=[64, 64], act=ReLU, z_act=Tanh, final_act=Sigmoid,
    #   d_rate=0.1 (identity in eval), max_size-min_size=3, latent_dim=16, l_mult=1
    kwargs = dict(
        channels=[64, 64],
        act="relu",
        z_act="tanh",
        final_act="sigmoid",
        d_rate=0.1,
        max_size=19,
        min_size=16,
        latent_dim=16,
        l_mult=1,
    )

    key = jax.random.PRNGKey(0)
    kparams, kx1, kx2 = jax.random.split(key, 3)
    packed, raw_layers, hidden_dims = build_autoencoder_params(kparams, **kwargs)
    out_dim = packed["out_dim"]
    lat_dim = packed["latent_dim"]

    # Two batch sizes: tiny (single grid step) and one that exercises batch
    # padding + a multi-step "parallel" grid.
    for B, kx in ((8, kx1), (40, kx2)):
        x = jax.random.normal(kx, (B, hidden_dims[0]), jnp.float32)

        d_pad, z_pad = autoencoder_forward(packed, x)
        d_pad = jax.block_until_ready(d_pad)
        z_pad = jax.block_until_ready(z_pad)

        # Slice only for the correctness check; consumers may keep padded bufs.
        d = d_pad[:B, :out_dim]
        z = z_pad[:B, :lat_dim]
        assert d.shape == (B, out_dim) and z.shape == (B, lat_dim)

        # Tight check vs. bf16-matched reference (same numerics as the kernel).
        d_bf, z_bf = _ref_forward_bf16(raw_layers, packed["z_idx"], x)
        assert jnp.allclose(d, d_bf, atol=1e-2, rtol=1e-2)
        assert jnp.allclose(z, z_bf, atol=1e-2, rtol=1e-2)

        # Loose sanity check vs. full-f32 PyTorch-equivalent semantics
        # (bf16 weights introduce ~1e-3..1e-2 deviation).
        d_f32, z_f32 = _ref_forward_f32(raw_layers, packed["z_idx"], x)
        assert jnp.allclose(d, d_f32, atol=1e-1, rtol=1e-1)
        assert jnp.allclose(z, z_f32, atol=1e-1, rtol=1e-1)

    print("KERNEL_OK")
</pallas_src>

<mosaic_0001>
module attributes {stable_mosaic.version = 11 : i64} {
  func.func @_fused_ae_kernel(%arg0: i32, %arg1: memref<8x64xf32, #tpu.memory_space<vmem>>, %arg2: memref<8x128x128xbf16, #tpu.memory_space<vmem>>, %arg3: memref<8x1x128xf32, #tpu.memory_space<vmem>>, %arg4: memref<8x128xf32, #tpu.memory_space<vmem>>, %arg5: memref<8x128xf32, #tpu.memory_space<vmem>>) attributes {dimension_semantics = [#tpu.dimension_semantics<parallel>], iteration_bounds = array<i64: 1>, scalar_prefetch = 0 : i64, scratch_operands = 0 : i64, tpu.core_type = #tpu.core_type<tc>, window_params = [{transform_indices = @transform_0, window_bounds = array<i64: 8, 64>}, {pipeline_mode = #tpu.pipeline_mode<synchronous>, transform_indices = @transform_1, window_bounds = array<i64: 8, 128, 128>}, {pipeline_mode = #tpu.pipeline_mode<synchronous>, transform_indices = @transform_2, window_bounds = array<i64: 8, 1, 128>}, {transform_indices = @transform_3, window_bounds = array<i64: 8, 128>}, {transform_indices = @transform_4, window_bounds = array<i64: 8, 128>}]} {
    %c0 = arith.constant 0 : index
    %c0_0 = arith.constant 0 : index
    %0 = vector.load %arg1[%c0, %c0_0] : memref<8x64xf32, #tpu.memory_space<vmem>>, vector<8x64xf32>
    %c0_1 = arith.constant 0 : index
    %c0_2 = arith.constant 0 : index
    %c0_3 = arith.constant 0 : index
    %1 = vector.load %arg2[%c0_1, %c0_2, %c0_3] : memref<8x128x128xbf16, #tpu.memory_space<vmem>>, vector<1x64x128xbf16>
    %2 = vector.shape_cast %1 : vector<1x64x128xbf16> to vector<64x128xbf16>
    %3 = arith.truncf %0 : vector<8x64xf32> to vector<8x64xbf16>
    %cst = arith.constant dense<0.000000e+00> : vector<8x128xf32>
    %4 = tpu.matmul %3, %2, %cst {dimension_numbers = #tpu.dot_dimension_numbers<[1], [0], [0], [1], [0, 0, 1, 1], [], []>} : vector<8x64xbf16>, vector<64x128xbf16>, vector<8x128xf32> -> vector<8x128xf32>
    %c0_4 = arith.constant 0 : index
    %c0_5 = arith.constant 0 : index
    %c0_6 = arith.constant 0 : index
    %5 = vector.load %arg3[%c0_4, %c0_5, %c0_6] : memref<8x1x128xf32, #tpu.memory_space<vmem>>, vector<1x1x128xf32>
    %6 = vector.shape_cast %5 : vector<1x1x128xf32> to vector<1x128xf32>
    %7 = vector.broadcast %6 : vector<1x128xf32> to vector<8x128xf32>
    %8 = arith.addf %4, %7 : vector<8x128xf32>
    %cst_7 = arith.constant 0.000000e+00 : f32
    %9 = vector.broadcast %cst_7 : f32 to vector<8x128xf32>
    %10 = arith.maximumf %8, %9 : vector<8x128xf32>
    %c1 = arith.constant 1 : index
    %c0_8 = arith.constant 0 : index
    %c0_9 = arith.constant 0 : index
    %11 = vector.load %arg2[%c1, %c0_8, %c0_9] : memref<8x128x128xbf16, #tpu.memory_space<vmem>>, vector<1x128x128xbf16>
    %12 = vector.shape_cast %11 : vector<1x128x128xbf16> to vector<128x128xbf16>
    %13 = arith.truncf %10 : vector<8x128xf32> to vector<8x128xbf16>
    %cst_10 = arith.constant dense<0.000000e+00> : vector<8x128xf32>
    %14 = tpu.matmul %13, %12, %cst_10 {dimension_numbers = #tpu.dot_dimension_numbers<[1], [0], [0], [1], [0, 0, 1, 1], [], []>} : vector<8x128xbf16>, vector<128x128xbf16>, vector<8x128xf32> -> vector<8x128xf32>
    %c1_11 = arith.constant 1 : index
    %c0_12 = arith.constant 0 : index
    %c0_13 = arith.constant 0 : index
    %15 = vector.load %arg3[%c1_11, %c0_12, %c0_13] : memref<8x1x128xf32, #tpu.memory_space<vmem>>, vector<1x1x128xf32>
    %16 = vector.shape_cast %15 : vector<1x1x128xf32> to vector<1x128xf32>
    %17 = vector.broadcast %16 : vector<1x128xf32> to vector<8x128xf32>
    %18 = arith.addf %14, %17 : vector<8x128xf32>
    %cst_14 = arith.constant 0.000000e+00 : f32
    %19 = vector.broadcast %cst_14 : f32 to vector<8x128xf32>
    %20 = arith.maximumf %18, %19 : vector<8x128xf32>
    %c2 = arith.constant 2 : index
    %c0_15 = arith.constant 0 : index
    %c0_16 = arith.constant 0 : index
    %21 = vector.load %arg2[%c2, %c0_15, %c0_16] : memref<8x128x128xbf16, #tpu.memory_space<vmem>>, vector<1x128x128xbf16>
    %22 = vector.shape_cast %21 : vector<1x128x128xbf16> to vector<128x128xbf16>
    %23 = arith.truncf %20 : vector<8x128xf32> to vector<8x128xbf16>
    %cst_17 = arith.constant dense<0.000000e+00> : vector<8x128xf32>
    %24 = tpu.matmul %23, %22, %cst_17 {dimension_numbers = #tpu.dot_dimension_numbers<[1], [0], [0], [1], [0, 0, 1, 1], [], []>} : vector<8x128xbf16>, vector<128x128xbf16>, vector<8x128xf32> -> vector<8x128xf32>
    %c2_18 = arith.constant 2 : index
    %c0_19 = arith.constant 0 : index
    %c0_20 = arith.constant 0 : index
    %25 = vector.load %arg3[%c2_18, %c0_19, %c0_20] : memref<8x1x128xf32, #tpu.memory_space<vmem>>, vector<1x1x128xf32>
    %26 = vector.shape_cast %25 : vector<1x1x128xf32> to vector<1x128xf32>
    %27 = vector.broadcast %26 : vector<1x128xf32> to vector<8x128xf32>
    %28 = arith.addf %24, %27 : vector<8x128xf32>
    %cst_21 = arith.constant 0.000000e+00 : f32
    %29 = vector.broadcast %cst_21 : f32 to vector<8x128xf32>
    %30 = arith.maximumf %28, %29 : vector<8x128xf32>
    %c3 = arith.constant 3 : index
    %c0_22 = arith.constant 0 : index
    %c0_23 = arith.constant 0 : index
    %31 = vector.load %arg2[%c3, %c0_22, %c0_23] : memref<8x128x128xbf16, #tpu.memory_space<vmem>>, vector<1x128x128xbf16>
    %32 = vector.shape_cast %31 : vector<1x128x128xbf16> to vector<128x128xbf16>
    %33 = arith.truncf %30 : vector<8x128xf32> to vector<8x128xbf16>
    %cst_24 = arith.constant dense<0.000000e+00> : vector<8x128xf32>
    %34 = tpu.matmul %33, %32, %cst_24 {dimension_numbers = #tpu.dot_dimension_numbers<[1], [0], [0], [1], [0, 0, 1, 1], [], []>} : vector<8x128xbf16>, vector<128x128xbf16>, vector<8x128xf32> -> vector<8x128xf32>
    %c3_25 = arith.constant 3 : index
    %c0_26 = arith.constant 0 : index
    %c0_27 = arith.constant 0 : index
    %35 = vector.load %arg3[%c3_25, %c0_26, %c0_27] : memref<8x1x128xf32, #tpu.memory_space<vmem>>, vector<1x1x128xf32>
    %36 = vector.shape_cast %35 : vector<1x1x128xf32> to vector<1x128xf32>
    %37 = vector.broadcast %36 : vector<1x128xf32> to vector<8x128xf32>
    %38 = arith.addf %34, %37 : vector<8x128xf32>
    %39 = math.tanh %38 : vector<8x128xf32>
    %c0_28 = arith.constant 0 : index
    %c0_29 = arith.constant 0 : index
    %40 = vector.load %arg5[%c0_28, %c0_29] : memref<8x128xf32, #tpu.memory_space<vmem>>, vector<8x128xf32>
    tpu.vector_store %arg5[%c0_28, %c0_29], %39 {strides = array<i32>} : memref<8x128xf32, #tpu.memory_space<vmem>>, vector<8x128xf32>,
    %c4 = arith.constant 4 : index
    %c0_30 = arith.constant 0 : index
    %c0_31 = arith.constant 0 : index
    %41 = vector.load %arg2[%c4, %c0_30, %c0_31] : memref<8x128x128xbf16, #tpu.memory_space<vmem>>, vector<1x128x128xbf16>
    %42 = vector.shape_cast %41 : vector<1x128x128xbf16> to vector<128x128xbf16>
    %43 = arith.truncf %39 : vector<8x128xf32> to vector<8x128xbf16>
    %cst_32 = arith.constant dense<0.000000e+00> : vector<8x128xf32>
    %44 = tpu.matmul %43, %42, %cst_32 {dimension_numbers = #tpu.dot_dimension_numbers<[1], [0], [0], [1], [0, 0, 1, 1], [], []>} : vector<8x128xbf16>, vector<128x128xbf16>, vector<8x128xf32> -> vector<8x128xf32>
    %c4_33 = arith.constant 4 : index
    %c0_34 = arith.constant 0 : index
    %c0_35 = arith.constant 0 : index
    %45 = vector.load %arg3[%c4_33, %c0_34, %c0_35] : memref<8x1x128xf32, #tpu.memory_space<vmem>>, vector<1x1x128xf32>
    %46 = vector.shape_cast %45 : vector<1x1x128xf32> to vector<1x128xf32>
    %47 = vector.broadcast %46 : vector<1x128xf32> to vector<8x128xf32>
    %48 = arith.addf %44, %47 : vector<8x128xf32>
    %cst_36 = arith.constant 0.000000e+00 : f32
    %49 = vector.broadcast %cst_36 : f32 to vector<8x128xf32>
    %50 = arith.maximumf %48, %49 : vector<8x128xf32>
    %c5 = arith.constant 5 : index
    %c0_37 = arith.constant 0 : index
    %c0_38 = arith.constant 0 : index
    %51 = vector.load %arg2[%c5, %c0_37, %c0_38] : memref<8x128x128xbf16, #tpu.memory_space<vmem>>, vector<1x128x128xbf16>
    %52 = vector.shape_cast %51 : vector<1x128x128xbf16> to vector<128x128xbf16>
    %53 = arith.truncf %50 : vector<8x128xf32> to vector<8x128xbf16>
    %cst_39 = arith.constant dense<0.000000e+00> : vector<8x128xf32>
    %54 = tpu.matmul %53, %52, %cst_39 {dimension_numbers = #tpu.dot_dimension_numbers<[1], [0], [0], [1], [0, 0, 1, 1], [], []>} : vector<8x128xbf16>, vector<128x128xbf16>, vector<8x128xf32> -> vector<8x128xf32>
    %c5_40 = arith.constant 5 : index
    %c0_41 = arith.constant 0 : index
    %c0_42 = arith.constant 0 : index
    %55 = vector.load %arg3[%c5_40, %c0_41, %c0_42] : memref<8x1x128xf32, #tpu.memory_space<vmem>>, vector<1x1x128xf32>
    %56 = vector.shape_cast %55 : vector<1x1x128xf32> to vector<1x128xf32>
    %57 = vector.broadcast %56 : vector<1x128xf32> to vector<8x128xf32>
    %58 = arith.addf %54, %57 : vector<8x128xf32>
    %cst_43 = arith.constant 0.000000e+00 : f32
    %59 = vector.broadcast %cst_43 : f32 to vector<8x128xf32>
    %60 = arith.maximumf %58, %59 : vector<8x128xf32>
    %c6 = arith.constant 6 : index
    %c0_44 = arith.constant 0 : index
    %c0_45 = arith.constant 0 : index
    %61 = vector.load %arg2[%c6, %c0_44, %c0_45] : memref<8x128x128xbf16, #tpu.memory_space<vmem>>, vector<1x128x128xbf16>
    %62 = vector.shape_cast %61 : vector<1x128x128xbf16> to vector<128x128xbf16>
    %63 = arith.truncf %60 : vector<8x128xf32> to vector<8x128xbf16>
    %cst_46 = arith.constant dense<0.000000e+00> : vector<8x128xf32>
    %64 = tpu.matmul %63, %62, %cst_46 {dimension_numbers = #tpu.dot_dimension_numbers<[1], [0], [0], [1], [0, 0, 1, 1], [], []>} : vector<8x128xbf16>, vector<128x128xbf16>, vector<8x128xf32> -> vector<8x128xf32>
    %c6_47 = arith.constant 6 : index
    %c0_48 = arith.constant 0 : index
    %c0_49 = arith.constant 0 : index
    %65 = vector.load %arg3[%c6_47, %c0_48, %c0_49] : memref<8x1x128xf32, #tpu.memory_space<vmem>>, vector<1x1x128xf32>
    %66 = vector.shape_cast %65 : vector<1x1x128xf32> to vector<1x128xf32>
    %67 = vector.broadcast %66 : vector<1x128xf32> to vector<8x128xf32>
    %68 = arith.addf %64, %67 : vector<8x128xf32>
    %cst_50 = arith.constant 0.000000e+00 : f32
    %69 = vector.broadcast %cst_50 : f32 to vector<8x128xf32>
    %70 = arith.maximumf %68, %69 : vector<8x128xf32>
    %c7 = arith.constant 7 : index
    %c0_51 = arith.constant 0 : index
    %c0_52 = arith.constant 0 : index
    %71 = vector.load %arg2[%c7, %c0_51, %c0_52] : memref<8x128x128xbf16, #tpu.memory_space<vmem>>, vector<1x128x128xbf16>
    %72 = vector.shape_cast %71 : vector<1x128x128xbf16> to vector<128x128xbf16>
    %73 = arith.truncf %70 : vector<8x128xf32> to vector<8x128xbf16>
    %cst_53 = arith.constant dense<0.000000e+00> : vector<8x128xf32>
    %74 = tpu.matmul %73, %72, %cst_53 {dimension_numbers = #tpu.dot_dimension_numbers<[1], [0], [0], [1], [0, 0, 1, 1], [], []>} : vector<8x128xbf16>, vector<128x128xbf16>, vector<8x128xf32> -> vector<8x128xf32>
    %c7_54 = arith.constant 7 : index
    %c0_55 = arith.constant 0 : index
    %c0_56 = arith.constant 0 : index
    %75 = vector.load %arg3[%c7_54, %c0_55, %c0_56] : memref<8x1x128xf32, #tpu.memory_space<vmem>>, vector<1x1x128xf32>
    %76 = vector.shape_cast %75 : vector<1x1x128xf32> to vector<1x128xf32>
    %77 = vector.broadcast %76 : vector<1x128xf32> to vector<8x128xf32>
    %78 = arith.addf %74, %77 : vector<8x128xf32>
    %79 = arith.negf %78 : vector<8x128xf32>
    %80 = math.exp %79 : vector<8x128xf32>
    %cst_57 = arith.constant 1.000000e+00 : f32
    %81 = vector.broadcast %cst_57 : f32 to vector<8x128xf32>
    %82 = arith.addf %81, %80 : vector<8x128xf32>
    %83 = arith.divf %81, %82 : vector<8x128xf32>
    %c0_58 = arith.constant 0 : index
    %c0_59 = arith.constant 0 : index
    %84 = vector.load %arg4[%c0_58, %c0_59] : memref<8x128xf32, #tpu.memory_space<vmem>>, vector<8x128xf32>
    tpu.vector_store %arg4[%c0_58, %c0_59], %83 {strides = array<i32>} : memref<8x128xf32, #tpu.memory_space<vmem>>, vector<8x128xf32>,
    return
  }
  func.func @transform_0(%arg0: i32) -> (i32, i32) {
    %c0_i32 = arith.constant 0 : i32
    %c0_i32_0 = arith.constant 0 : i32
    return %arg0, %c0_i32 : i32, i32
  }
  func.func @transform_1(%arg0: i32) -> (i32, i32, i32) {
    %c0_i32 = arith.constant 0 : i32
    %c0_i32_0 = arith.constant 0 : i32
    %c0_i32_1 = arith.constant 0 : i32
    %c0_i32_2 = arith.constant 0 : i32
    return %c0_i32, %c0_i32_0, %c0_i32_1 : i32, i32, i32
  }
  func.func @transform_2(%arg0: i32) -> (i32, i32, i32) {
    %c0_i32 = arith.constant 0 : i32
    %c0_i32_0 = arith.constant 0 : i32
    %c0_i32_1 = arith.constant 0 : i32
    %c0_i32_2 = arith.constant 0 : i32
    return %c0_i32, %c0_i32_0, %c0_i32_1 : i32, i32, i32
  }
  func.func @transform_3(%arg0: i32) -> (i32, i32) {
    %c0_i32 = arith.constant 0 : i32
    %c0_i32_0 = arith.constant 0 : i32
    return %arg0, %c0_i32 : i32, i32
  }
  func.func @transform_4(%arg0: i32) -> (i32, i32) {
    %c0_i32 = arith.constant 0 : i32
    %c0_i32_0 = arith.constant 0 : i32
    return %arg0, %c0_i32 : i32, i32
  }
}

</mosaic_0001>

<bundles_post_ra>
// kernel: tpu_custom_call.1
= control target key start
LH: loop header
LB: loop body
LE: loop exit
PB: predicated region body
PF: predicated region fallthrough
CT: control target
= control target key end

     0   :  { %10 = vsyncpa [#allocation3], 0  ;;  %s1588_s0 = inlined_call_operand.hbm [shape: f32[8,64], index: 0, kind: input, shape index: {}]   ;;  %s1589_s1 = inlined_call_operand.hbm [shape: bf16[8,128,128], index: 1, kind: input, shape index: {}]   ;;  %s1590_s2 = inlined_call_operand.hbm [shape: f32[8,1,128], index: 2, kind: input, shape index: {}]   ;;  %s1591_s3 = inlined_call_operand.hbm [shape: f32[8,128], index: 3, kind: output, shape index: {0}]   ;;  %s1592_s4 = inlined_call_operand.hbm [shape: f32[8,128], index: 4, kind: output, shape index: {1}]  }
   0x1   :  { %11 = vsyncpa [#allocation6], 0 }
   0x2   :  { %12 = vsyncpa [#allocation4], 0 }
   0x3   :  { %13 = vsyncpa [#allocation10], 0  ;;  %s1461_s15 = smov [#allocation5]  }
   0x4   :  { %s29_s16 = sshll.u32 %s1461_s15, 4  ;;  %s30_s16 = int_to_ptr.vmem [resolvable:$true] %s29_s16 }
   0x5   :  { %s1361_s17 = scalar_lea.vmem %s30_s16, 8192  ;;  %p1366_p1 = scmp.lt.s32.totalorder %s30_s16, %s30_s16 }
   0x6   :  { %p1362_p0 = scmp.ne.s32.totalorder %s30_s16, %s1361_s17  ;;  %p1367_p2 = scmp.lt.s32.totalorder %s1361_s17, %s1361_s17 }
   0x8   :  { %p1368_p3 = por %p1367_p2, %p1366_p1 }
   0xa   :  { %p1369_p4 = pnand %p1368_p3, %p1362_p0 }
   0xc   :  { %1372 = shalt.err (!%p1369_p4)
}
   0xd   :  { %s1462_s18 = smov 64   ;;  %s1463_s19 = smov 4  }
   0xe   :  { %35 = dma.hbm_to_vmem [thread:$0]  %s1589_s1, 8192, %s30_s16, [#allocation6], %s1462_s18, %s1462_s18, %s1463_s19  }
   0xf   :  { %s1464_s22 = smov [#allocation2]   ;;  %s1465_s24 = smov [#allocation7]  }
  0x10   :  { %s20_s23 = sshll.u32 %s1464_s22, 4  ;;  %s41_s25 = sshll.u32 %s1465_s24, 4  ;;  %s21_s23 = int_to_ptr.vmem [resolvable:$true] %s20_s23  ;;  %s42_s25 = int_to_ptr.vmem [resolvable:$true] %s41_s25 }
  0x11   :  { %s1381_s26 = scalar_lea.vmem %s21_s23, 128  ;;  %p1386_p6 = scmp.lt.s32.totalorder %s21_s23, %s21_s23 }
  0x12   :  { %p1382_p5 = scmp.ne.s32.totalorder %s21_s23, %s1381_s26  ;;  %p1387_p7 = scmp.lt.s32.totalorder %s1381_s26, %s1381_s26 }
  0x14   :  { %p1388_p8 = por %p1387_p7, %p1386_p6 }
  0x16   :  { %p1389_p9 = pnand %p1388_p8, %p1382_p5 }
  0x18   :  { %1392 = shalt.err (!%p1389_p9)
}
  0x19   :  { %23 = dma.hbm_to_vmem [thread:$0]  %s1588_s0, 128, %s21_s23, [#allocation3]  }
  0x1a   :  { %s1401_s29 = scalar_lea.vmem %s42_s25, 128  ;;  %p1406_p11 = scmp.lt.s32.totalorder %s42_s25, %s42_s25 }
  0x1b   :  { %p1402_p10 = scmp.ne.s32.totalorder %s42_s25, %s1401_s29  ;;  %p1407_p12 = scmp.lt.s32.totalorder %s1401_s29, %s1401_s29 }
  0x1d   :  { %p1408_p13 = por %p1407_p12, %p1406_p11 }
  0x1f   :  { %p1409_p0 = pnand %p1408_p13, %p1402_p10 }
  0x21   :  { %1412 = shalt.err (!%p1409_p0)
}
  0x22   :  { %s1466_s1 = smov 16   ;;  %s1467_s30 = smov 1  }
  0x23   :  { %47 = dma.hbm_to_vmem [thread:$0]  %s1590_s2, 128, %s42_s25, [#allocation6], %s1466_s1, %s1466_s1, %s1467_s30  }
  0x24   :  { %1453 = dma.done.wait [#allocation3], 128  }
  0x25   :  { %1454 = vsyncadd [#allocation3], 4294967168 }
  0x26   :  { %1455 = dma.done.wait [#allocation6], 8320  }
  0x27   :  { %1456 = vsyncadd [#allocation6], 4294958976  ;;  %v1468_v0 = vmov 0.0   ;;  %vm1469_vm0 = vmmov 0   ;;  %v1287_v1 = vld [vmem:[#allocation5 + $0x18] sm:$0xff]   ;;  %v1288_v2 = vld [vmem:[#allocation5 + $0x10] sm:$0xff]  }
  0x28   :  { %1124 = vmatprep.subr.bf16.mxu0 %v1468_v0  ;;  %1132 = vmatprep.mubr.msk.bf16.mxu0 %vm1469_vm0, %v1468_v0  ;;  %v1291_v3 = vld [vmem:[#allocation5 + $0x78] sm:$0xff]   ;;  %v1289_v4 = vld [vmem:[#allocation5 + $0x8] sm:$0xff]   ;;  %v1292_v5 = vld [vmem:[#allocation5 + $0x70] sm:$0xff]   ;;  %vm99_vm1 = vcmask 523264   ;;  %s1470_s0 = smov [#allocation9]  }
  0x29   :  { %1136 = vmatprep.subr.bf16.mxu1 %v1468_v0  ;;  %1152 = vmatprep.mubr.msk.bf16.mxu1 %vm1469_vm0, %v1468_v0  ;;  %v1290_v6 = vld [vmem:[#allocation5] sm:$0xff]   ;;  %v58_v7 = vld [vmem:[#allocation2] sm:$0xff]  ;;  %v1293_v8 = vld [vmem:[#allocation5 + $0x68] sm:$0xff]   ;;  %s972_s2 = sshll.u32 %s1470_s0, 4  ;;  %s973_s2 = int_to_ptr.vmem [resolvable:$true] %s972_s2 }
  0x2a   :  { %1125 = vmatpush3.bf16.msra.mxu0 %v1287_v1  ;;  %1137 = vmatpush3.bf16.msra.mxu1 %v1291_v3  ;;  %v67_v9 = vpack.c.bf16 %v58_v7, %v58_v7  ;;  %v1294_v10 = vld [vmem:[#allocation5 + $0x60] sm:$0xff]   ;;  %v1295_v11 = vld [vmem:[#allocation5 + $0x58] sm:$0xff]   ;;  %v1296_v12 = vld [vmem:[#allocation5 + $0x50] sm:$0xff]   ;;  %s1413_s7 = scalar_lea.vmem %s973_s2, 128  ;;  %p1418_p2 = scmp.lt.s32.totalorder %s973_s2, %s973_s2 }
  0x2b   :  { %1126 = vmatprep.subr.bf16.mxu0 %v1468_v0  ;;  %1138 = vmatprep.subr.bf16.mxu1 %v1468_v0  ;;  %v1297_v13 = vld [vmem:[#allocation5 + $0x48] sm:$0xff]   ;;  %v1298_v14 = vld [vmem:[#allocation5 + $0x40] sm:$0xff]   ;;  %v1299_v15 = vld [vmem:[#allocation5 + $0xb8] sm:$0xff]   ;;  %p1414_p1 = scmp.ne.s32.totalorder %s973_s2, %s1413_s7  ;;  %p1419_p3 = scmp.lt.s32.totalorder %s1413_s7, %s1413_s7 }
  0x2c   :  { %v1300_v16 = vld [vmem:[#allocation5 + $0xb0] sm:$0xff]   ;;  %v1301_v17 = vld [vmem:[#allocation5 + $0xa8] sm:$0xff]   ;;  %v1302_v18 = vld [vmem:[#allocation5 + $0xa0] sm:$0xff]  }
  0x2d   :  { %v1303_v19 = vld [vmem:[#allocation5 + $0x98] sm:$0xff]   ;;  %v1304_v20 = vld [vmem:[#allocation5 + $0x90] sm:$0xff]   ;;  %v986_v21 = vld [vmem:[#allocation7] ss:$0 sm:$0xff]  ;;  %p1420_p4 = por %p1419_p3, %p1418_p2 }
  0x2e   :  { %1127 = vmatpush3.bf16.msra.mxu0 %v1288_v2  ;;  %1139 = vmatpush3.bf16.msra.mxu1 %v1292_v5  ;;  %v1305_v29 = vld [vmem:[#allocation5 + $0x88] sm:$0xff]   ;;  %v1306_v30 = vld [vmem:[#allocation5 + $0x80] sm:$0xff]   ;;  %v1307_v31 = vld [vmem:[#allocation5 + $0xf8] sm:$0xff]  }
  0x2f   :  { %1128 = vmatprep.subr.bf16.mxu0 %v1468_v0  ;;  %1140 = vmatprep.subr.bf16.mxu1 %v1468_v0  ;;  %v1308_v32 = vld [vmem:[#allocation5 + $0xf0] sm:$0xff]   ;;  %v1309_v33 = vld [vmem:[#allocation5 + $0xe8] sm:$0xff]   ;;  %v1310_v34 = vld [vmem:[#allocation5 + $0xe0] sm:$0xff]   ;;  %p1421_p5 = pnand %p1420_p4, %p1414_p1 }
  0x30   :  { %v1311_v35 = vld [vmem:[#allocation5 + $0xd8] sm:$0xff]   ;;  %v1312_v36 = vld [vmem:[#allocation5 + $0xd0] sm:$0xff]   ;;  %v992_v37 = vld [vmem:[#allocation7 + $0x1] ss:$0 sm:$0xff] }
  0x31   :  { %v1313_v45 = vld [vmem:[#allocation5 + $0xc8] sm:$0xff]   ;;  %v1314_v46 = vld [vmem:[#allocation5 + $0xc0] sm:$0xff]   ;;  %v1315_v47 = vld [vmem:[#allocation5 + $0x138] sm:$0xff]  }
  0x32   :  { %1129 = vmatpush3.bf16.msra.mxu0 %v1289_v4  ;;  %1141 = vmatpush3.bf16.msra.mxu1 %v1293_v8  ;;  %v1316_v48 = vld [vmem:[#allocation5 + $0x130] sm:$0xff]   ;;  %v1317_v49 = vld [vmem:[#allocation5 + $0x128] sm:$0xff]   ;;  %v1001_v50 = vld [vmem:[#allocation7 + $0x2] ss:$0 sm:$0xff] }
  0x33   :  { %1130 = vmatprep.subr.bf16.mxu0 %v1468_v0  ;;  %1142 = vmatprep.subr.bf16.mxu1 %v1468_v0  ;;  %v1318_v58 = vld [vmem:[#allocation5 + $0x120] sm:$0xff]   ;;  %v1319_v59 = vld [vmem:[#allocation5 + $0x118] sm:$0xff]   ;;  %v1320_v60 = vld [vmem:[#allocation5 + $0x110] sm:$0xff]  }
  0x34   :  { %v1321_v61 = vld [vmem:[#allocation5 + $0x108] sm:$0xff]   ;;  %v1322_v62 = vld [vmem:[#allocation5 + $0x100] sm:$0xff]   ;;  %v1323_v63 = vld [vmem:[#allocation5 + $0x178] sm:$0xff]  }
  0x35   :  { %v1324_v1 = vld [vmem:[#allocation5 + $0x170] sm:$0xff]   ;;  %v1325_v2 = vld [vmem:[#allocation5 + $0x168] sm:$0xff]   ;;  %v1326_v3 = vld [vmem:[#allocation5 + $0x160] sm:$0xff]  }
  0x36   :  { %1131 = vmatpush3.bf16.msra.mxu0 %v1290_v6  ;;  %1143 = vmatpush3.bf16.msra.mxu1 %v1294_v10  ;;  %v1327_v4 = vld [vmem:[#allocation5 + $0x158] sm:$0xff]   ;;  %v1328_v5 = vld [vmem:[#allocation5 + $0x150] sm:$0xff]   ;;  %v1010_v6 = vld [vmem:[#allocation7 + $0x3] ss:$0 sm:$0xff] }
  0x37   :  { %1156 = vmatprep.subr.bf16.mxu0 %v1468_v0  ;;  %1144 = vmatprep.subr.bf16.mxu1 %v1468_v0 }
  0x39   :  { %1133 = vmatmul.mubr.msk.bf16.vlgmr.msra.gmra.mxu0 %vm99_vm1, %v67_v9 }
  0x3a   :  { %1172 = vmatprep.mubr.msk.bf16.mxu0 %vm1469_vm0, %v1468_v0  ;;  %1145 = vmatpush3.bf16.msra.mxu1 %v1295_v11 }
  0x3b   :  { %1146 = vmatprep.subr.bf16.mxu1 %v1468_v0  ;;  %1157 = vmatpush3.bf16.msra.mxu0 %v1299_v15  ;;  %v1330_v15 = vld [vmem:[#allocation5 + $0x140] sm:$0xff]  }
  0x3c   :  { %1158 = vmatprep.subr.bf16.mxu0 %v1468_v0 }
  0x3e   :  { %1147 = vmatpush3.bf16.msra.mxu1 %v1296_v12 }
  0x3f   :  { %1148 = vmatprep.subr.bf16.mxu1 %v1468_v0  ;;  %1159 = vmatpush3.bf16.msra.mxu0 %v1300_v16  ;;  %v1331_v16 = vld [vmem:[#allocation5 + $0x1b8] sm:$0xff]  }
  0x40   :  { %1160 = vmatprep.subr.bf16.mxu0 %v1468_v0 }
  0x42   :  { %1149 = vmatpush3.bf16.msra.mxu1 %v1297_v13 }
  0x43   :  { %1150 = vmatprep.subr.bf16.mxu1 %v1468_v0  ;;  %1161 = vmatpush3.bf16.msra.mxu0 %v1301_v17  ;;  %v1332_v17 = vld [vmem:[#allocation5 + $0x1b0] sm:$0xff]  }
  0x44   :  { %1162 = vmatprep.subr.bf16.mxu0 %v1468_v0 }
  0x46   :  { %1151 = vmatpush3.bf16.msra.mxu1 %v1298_v14  ;;  %v1329_v14 = vld [vmem:[#allocation5 + $0x148] sm:$0xff]  }
  0x47   :  { %1176 = vmatprep.subr.bf16.mxu1 %v1468_v0  ;;  %1163 = vmatpush3.bf16.msra.mxu0 %v1302_v18  ;;  %v1333_v18 = vld [vmem:[#allocation5 + $0x1a8] sm:$0xff]  }
  0x48   :  { %1164 = vmatprep.subr.bf16.mxu0 %v1468_v0 }
  0x4b   :  { %1165 = vmatpush3.bf16.msra.mxu0 %v1303_v19  ;;  %v1334_v19 = vld [vmem:[#allocation5 + $0x1a0] sm:$0xff]  }
  0x4c   :  { %1166 = vmatprep.subr.bf16.mxu0 %v1468_v0 }
  0x4f   :  { %1167 = vmatpush3.bf16.msra.mxu0 %v1304_v20  ;;  %v1335_v20 = vld [vmem:[#allocation5 + $0x198] sm:$0xff]  }
  0x50   :  { %1168 = vmatprep.subr.bf16.mxu0 %v1468_v0 }
  0x53   :  { %1169 = vmatpush3.bf16.msra.mxu0 %v1305_v29 }
  0x54   :  { %1170 = vmatprep.subr.bf16.mxu0 %v1468_v0 }
  0x57   :  { %1171 = vmatpush3.bf16.msra.mxu0 %v1306_v30  ;;  %v1337_v30 = vld [vmem:[#allocation5 + $0x188] sm:$0xff]  }
  0x58   :  { %1196 = vmatprep.subr.bf16.mxu0 %v1468_v0 }
  0xf9   :  { %v137_v22 = vpop.f32.mrf.mxu0 }
  0xfa   :  { %v138_v23 = vadd.f32 %v986_v21, %v137_v22  ;;  %v1336_v21 = vld [vmem:[#allocation5 + $0x190] sm:$0xff]   ;;  %v1019_v22 = vld [vmem:[#allocation7 + $0x4] ss:$0 sm:$0xff] }
  0xfb   :  { %v1134_v24 = vpop.f32.mrf.mxu0 }
  0xfc   :  { %v143_v25 = vmax.f32 %v138_v23, 0.0 }
  0xfd   :  { %v140_v26 = vpop.f32.mrf.mxu0 }
  0xfe   :  { %v161_v27 = vpack.c.bf16 %v143_v25, %v143_v25 }
  0xff   :  { %v1135_v28 = vpop.f32.mrf.mxu0 }
 0x100   :  { %1153 = vmatmul.mubr.bf16.vlgmr.msra.gmra.mxu1 %v161_v27 }
 0x101   :  { %1192 = vmatprep.mubr.msk.bf16.mxu1 %vm1469_vm0, %v1468_v0  ;;  %1177 = vmatpush3.bf16.msra.mxu1 %v1307_v31  ;;  %v1338_v31 = vld [vmem:[#allocation5 + $0x180] sm:$0xff]  }
 0x102   :  { %1178 = vmatprep.subr.bf16.mxu1 %v1468_v0 }
 0x105   :  { %1179 = vmatpush3.bf16.msra.mxu1 %v1308_v32  ;;  %v1339_v32 = vld [vmem:[#allocation5 + $0x1f8] sm:$0xff]  }
 0x106   :  { %1180 = vmatprep.subr.bf16.mxu1 %v1468_v0 }
 0x109   :  { %1181 = vmatpush3.bf16.msra.mxu1 %v1309_v33  ;;  %v1340_v33 = vld [vmem:[#allocation5 + $0x1f0] sm:$0xff]  }
 0x10a   :  { %1182 = vmatprep.subr.bf16.mxu1 %v1468_v0 }
 0x10d   :  { %1183 = vmatpush3.bf16.msra.mxu1 %v1310_v34  ;;  %v1341_v34 = vld [vmem:[#allocation5 + $0x1e8] sm:$0xff]  }
 0x10e   :  { %1184 = vmatprep.subr.bf16.mxu1 %v1468_v0 }
 0x111   :  { %1185 = vmatpush3.bf16.msra.mxu1 %v1311_v35  ;;  %v1342_v35 = vld [vmem:[#allocation5 + $0x1e0] sm:$0xff]  }
 0x112   :  { %1186 = vmatprep.subr.bf16.mxu1 %v1468_v0 }
 0x115   :  { %1187 = vmatpush3.bf16.msra.mxu1 %v1312_v36  ;;  %v1343_v36 = vld [vmem:[#allocation5 + $0x1d8] sm:$0xff]  }
 0x116   :  { %1188 = vmatprep.subr.bf16.mxu1 %v1468_v0 }
 0x119   :  { %1189 = vmatpush3.bf16.msra.mxu1 %v1313_v45 }
 0x11a   :  { %1190 = vmatprep.subr.bf16.mxu1 %v1468_v0 }
 0x11d   :  { %1191 = vmatpush3.bf16.msra.mxu1 %v1314_v46  ;;  %v1345_v46 = vld [vmem:[#allocation5 + $0x1c8] sm:$0xff]  }
 0x11e   :  { %1216 = vmatprep.subr.bf16.mxu1 %v1468_v0 }
 0x1c0   :  { %v252_v38 = vpop.f32.mrf.mxu1 }
 0x1c1   :  { %v253_v39 = vadd.f32 %v992_v37, %v252_v38  ;;  %v1344_v37 = vld [vmem:[#allocation5 + $0x1d0] sm:$0xff]   ;;  %v1028_v38 = vld [vmem:[#allocation7 + $0x5] ss:$0 sm:$0xff] }
 0x1c2   :  { %v1154_v40 = vpop.f32.mrf.mxu1 }
 0x1c3   :  { %v258_v41 = vmax.f32 %v253_v39, 0.0 }
 0x1c4   :  { %v255_v42 = vpop.f32.mrf.mxu1 }
 0x1c5   :  { %v276_v43 = vpack.c.bf16 %v258_v41, %v258_v41 }
 0x1c6   :  { %v1155_v44 = vpop.f32.mrf.mxu1 }
 0x1c7   :  { %1173 = vmatmul.mubr.bf16.vlgmr.msra.gmra.mxu0 %v276_v43 }
 0x1c8   :  { %1212 = vmatprep.mubr.msk.bf16.mxu0 %vm1469_vm0, %v1468_v0  ;;  %1197 = vmatpush3.bf16.msra.mxu0 %v1315_v47  ;;  %v1346_v47 = vld [vmem:[#allocation5 + $0x1c0] sm:$0xff]  }
 0x1c9   :  { %1198 = vmatprep.subr.bf16.mxu0 %v1468_v0 }
 0x1cc   :  { %1199 = vmatpush3.bf16.msra.mxu0 %v1316_v48  ;;  %v1037_v48 = vld [vmem:[#allocation7 + $0x6] ss:$0 sm:$0xff] }
 0x1cd   :  { %1200 = vmatprep.subr.bf16.mxu0 %v1468_v0 }
 0x1d0   :  { %1201 = vmatpush3.bf16.msra.mxu0 %v1317_v49 }
 0x1d1   :  { %1202 = vmatprep.subr.bf16.mxu0 %v1468_v0 }
 0x1d4   :  { %1203 = vmatpush3.bf16.msra.mxu0 %v1318_v58 }
 0x1d5   :  { %1204 = vmatprep.subr.bf16.mxu0 %v1468_v0 }
 0x1d8   :  { %1205 = vmatpush3.bf16.msra.mxu0 %v1319_v59 }
 0x1d9   :  { %1206 = vmatprep.subr.bf16.mxu0 %v1468_v0 }
 0x1dc   :  { %1207 = vmatpush3.bf16.msra.mxu0 %v1320_v60 }
 0x1dd   :  { %1208 = vmatprep.subr.bf16.mxu0 %v1468_v0 }
 0x1e0   :  { %1209 = vmatpush3.bf16.msra.mxu0 %v1321_v61 }
 0x1e1   :  { %1210 = vmatprep.subr.bf16.mxu0 %v1468_v0 }
 0x1e4   :  { %1211 = vmatpush3.bf16.msra.mxu0 %v1322_v62 }
 0x1e5   :  { %1236 = vmatprep.subr.bf16.mxu0 %v1468_v0 }
 0x287   :  { %v367_v51 = vpop.f32.mrf.mxu0 }
 0x288   :  { %v368_v52 = vadd.f32 %v1001_v50, %v367_v51 }
 0x289   :  { %v1174_v53 = vpop.f32.mrf.mxu0 }
 0x28a   :  { %v373_v54 = vmax.f32 %v368_v52, 0.0 }
 0x28b   :  { %v370_v55 = vpop.f32.mrf.mxu0 }
 0x28c   :  { %v391_v56 = vpack.c.bf16 %v373_v54, %v373_v54 }
 0x28d   :  { %v1175_v57 = vpop.f32.mrf.mxu0 }
 0x28e   :  { %1193 = vmatmul.mubr.bf16.vlgmr.msra.gmra.mxu1 %v391_v56 }
 0x28f   :  { %1232 = vmatprep.mubr.msk.bf16.mxu1 %vm1469_vm0, %v1468_v0  ;;  %1217 = vmatpush3.bf16.msra.mxu1 %v1323_v63 }
 0x290   :  { %1218 = vmatprep.subr.bf16.mxu1 %v1468_v0 }
 0x293   :  { %1219 = vmatpush3.bf16.msra.mxu1 %v1324_v1 }
 0x294   :  { %1220 = vmatprep.subr.bf16.mxu1 %v1468_v0 }
 0x297   :  { %1221 = vmatpush3.bf16.msra.mxu1 %v1325_v2 }
 0x298   :  { %1222 = vmatprep.subr.bf16.mxu1 %v1468_v0 }
 0x29b   :  { %1223 = vmatpush3.bf16.msra.mxu1 %v1326_v3 }
 0x29c   :  { %1224 = vmatprep.subr.bf16.mxu1 %v1468_v0 }
 0x29f   :  { %1225 = vmatpush3.bf16.msra.mxu1 %v1327_v4 }
 0x2a0   :  { %1226 = vmatprep.subr.bf16.mxu1 %v1468_v0 }
 0x2a3   :  { %1227 = vmatpush3.bf16.msra.mxu1 %v1328_v5 }
 0x2a4   :  { %1228 = vmatprep.subr.bf16.mxu1 %v1468_v0 }
 0x2a7   :  { %1229 = vmatpush3.bf16.msra.mxu1 %v1329_v14 }
 0x2a8   :  { %1230 = vmatprep.subr.bf16.mxu1 %v1468_v0 }
 0x2ab   :  { %1231 = vmatpush3.bf16.msra.mxu1 %v1330_v15 }
 0x2ac   :  { %1256 = vmatprep.subr.bf16.mxu1 %v1468_v0 }
 0x34e   :  { %v482_v7 = vpop.f32.mrf.mxu1 }
 0x34f   :  { %v483_v8 = vadd.f32 %v1010_v6, %v482_v7 }
 0x350   :  { %v1194_v9 = vpop.f32.mrf.mxu1 }
 0x351   :  { %1347 = vtanh.f32 %v483_v8 }
 0x352   :  { %v485_v10 = vpop.f32.mrf.mxu1 }
 0x354   :  { %v1195_v11 = vpop.f32.mrf.mxu1 }
 0x35e   :  { %v1348_v12 = vpop.eup %1347 }
 0x35f   :  { %489 = vst [vmem:[#allocation9] sm:$0xff] %v1348_v12  ;;  %v507_v13 = vpack.c.bf16 %v1348_v12, %v1348_v12 }
 0x361   :  { %1213 = vmatmul.mubr.bf16.vlgmr.msra.gmra.mxu0 %v507_v13 }
 0x362   :  { %1252 = vmatprep.mubr.msk.bf16.mxu0 %vm1469_vm0, %v1468_v0  ;;  %1237 = vmatpush3.bf16.msra.mxu0 %v1331_v16 }
 0x363   :  { %1238 = vmatprep.subr.bf16.mxu0 %v1468_v0 }
 0x366   :  { %1239 = vmatpush3.bf16.msra.mxu0 %v1332_v17 }
 0x367   :  { %1240 = vmatprep.subr.bf16.mxu0 %v1468_v0 }
 0x36a   :  { %1241 = vmatpush3.bf16.msra.mxu0 %v1333_v18 }
 0x36b   :  { %1242 = vmatprep.subr.bf16.mxu0 %v1468_v0 }
 0x36e   :  { %1243 = vmatpush3.bf16.msra.mxu0 %v1334_v19 }
 0x36f   :  { %1244 = vmatprep.subr.bf16.mxu0 %v1468_v0 }
 0x372   :  { %1245 = vmatpush3.bf16.msra.mxu0 %v1335_v20 }
 0x373   :  { %1246 = vmatprep.subr.bf16.mxu0 %v1468_v0 }
 0x376   :  { %1247 = vmatpush3.bf16.msra.mxu0 %v1336_v21 }
 0x377   :  { %1248 = vmatprep.subr.bf16.mxu0 %v1468_v0 }
 0x37a   :  { %1249 = vmatpush3.bf16.msra.mxu0 %v1337_v30 }
 0x37b   :  { %1250 = vmatprep.subr.bf16.mxu0 %v1468_v0 }
 0x37e   :  { %1251 = vmatpush3.bf16.msra.mxu0 %v1338_v31 }
 0x421   :  { %v598_v23 = vpop.f32.mrf.mxu0 }
 0x422   :  { %v599_v24 = vadd.f32 %v1019_v22, %v598_v23 }
 0x423   :  { %v1214_v25 = vpop.f32.mrf.mxu0 }
 0x424   :  { %v604_v26 = vmax.f32 %v599_v24, 0.0 }
 0x425   :  { %v601_v27 = vpop.f32.mrf.mxu0 }
 0x426   :  { %v622_v28 = vpack.c.bf16 %v604_v26, %v604_v26 }
 0x427   :  { %v1215_v29 = vpop.f32.mrf.mxu0 }
 0x428   :  { %1233 = vmatmul.mubr.bf16.vlgmr.msra.gmra.mxu1 %v622_v28 }
 0x429   :  { %1272 = vmatprep.mubr.msk.bf16.mxu1 %vm1469_vm0, %v1468_v0  ;;  %1257 = vmatpush3.bf16.msra.mxu1 %v1339_v32 }
 0x42a   :  { %1258 = vmatprep.subr.bf16.mxu1 %v1468_v0 }
 0x42d   :  { %1259 = vmatpush3.bf16.msra.mxu1 %v1340_v33 }
 0x42e   :  { %1260 = vmatprep.subr.bf16.mxu1 %v1468_v0 }
 0x431   :  { %1261 = vmatpush3.bf16.msra.mxu1 %v1341_v34 }
 0x432   :  { %1262 = vmatprep.subr.bf16.mxu1 %v1468_v0 }
 0x435   :  { %1263 = vmatpush3.bf16.msra.mxu1 %v1342_v35 }
 0x436   :  { %1264 = vmatprep.subr.bf16.mxu1 %v1468_v0 }
 0x439   :  { %1265 = vmatpush3.bf16.msra.mxu1 %v1343_v36 }
 0x43a   :  { %1266 = vmatprep.subr.bf16.mxu1 %v1468_v0 }
 0x43d   :  { %1267 = vmatpush3.bf16.msra.mxu1 %v1344_v37 }
 0x43e   :  { %1268 = vmatprep.subr.bf16.mxu1 %v1468_v0 }
 0x441   :  { %1269 = vmatpush3.bf16.msra.mxu1 %v1345_v46 }
 0x442   :  { %1270 = vmatprep.subr.bf16.mxu1 %v1468_v0 }
 0x445   :  { %1271 = vmatpush3.bf16.msra.mxu1 %v1346_v47 }
 0x4e8   :  { %v713_v39 = vpop.f32.mrf.mxu1 }
 0x4e9   :  { %v714_v40 = vadd.f32 %v1028_v38, %v713_v39 }
 0x4ea   :  { %v1234_v41 = vpop.f32.mrf.mxu1 }
 0x4eb   :  { %v719_v42 = vmax.f32 %v714_v40, 0.0 }
 0x4ec   :  { %v716_v43 = vpop.f32.mrf.mxu1 }
 0x4ed   :  { %v737_v44 = vpack.c.bf16 %v719_v42, %v719_v42 }
 0x4ee   :  { %v1235_v45 = vpop.f32.mrf.mxu1 }
 0x4ef   :  { %1253 = vmatmul.mubr.bf16.vlgmr.msra.gmra.mxu0 %v737_v44 }
 0x5af   :  { %v828_v49 = vpop.f32.mrf.mxu0 }
 0x5b0   :  { %v829_v50 = vadd.f32 %v1037_v48, %v828_v49 }
 0x5b1   :  { %v1254_v51 = vpop.f32.mrf.mxu0 }
 0x5b2   :  { %v834_v52 = vmax.f32 %v829_v50, 0.0 }
 0x5b3   :  { %v831_v53 = vpop.f32.mrf.mxu0 }
 0x5b4   :  { %v852_v54 = vpack.c.bf16 %v834_v52, %v834_v52 }
 0x5b5   :  { %v1255_v55 = vpop.f32.mrf.mxu0 }
 0x5b6   :  { %1273 = vmatmul.mubr.bf16.vlgmr.msra.gmra.mxu1 %v852_v54 }
 0x5b7   :  { %1424 = shalt.err (!%p1421_p5)
}
 0x5b8   :  { %975 = dma.vmem_to_hbm [thread:$0]  %s973_s2, 128, %s1592_s4, [#allocation10]   ;;  %v1046_v0 = vld [vmem:[#allocation7 + $0x7] ss:$0 sm:$0xff] }
 0x5b9   :  { %s1471_s10 = smov [#allocation8]  }
 0x5ba   :  { %s962_s11 = sshll.u32 %s1471_s10, 4  ;;  %s963_s11 = int_to_ptr.vmem [resolvable:$true] %s962_s11 }
 0x5bb   :  { %s1433_s12 = scalar_lea.vmem %s963_s11, 128  ;;  %p1438_p7 = scmp.lt.s32.totalorder %s963_s11, %s963_s11 }
 0x5bc   :  { %p1434_p6 = scmp.ne.s32.totalorder %s963_s11, %s1433_s12  ;;  %p1439_p8 = scmp.lt.s32.totalorder %s1433_s12, %s1433_s12 }
 0x5be   :  { %p1440_p9 = por %p1439_p8, %p1438_p7 }
 0x5c0   :  { %p1441_p10 = pnand %p1440_p9, %p1434_p6 }
 0x676   :  { %v943_v56 = vpop.f32.mrf.mxu1 }
 0x677   :  { %v944_v57 = vadd.f32 %v1046_v0, %v943_v56 }
 0x678   :  { %v1274_v58 = vpop.f32.mrf.mxu1 }
 0x679   :  { %v1055_v59 = vmul.f32 -1.442695, %v944_v57 }
 0x67a   :  { %v946_v60 = vpop.f32.mrf.mxu1 }
 0x67b   :  { %1349 = vpow2.f32 %v1055_v59 }
 0x67c   :  { %v1275_v61 = vpop.f32.mrf.mxu1 }
 0x688   :  { %v1350_v62 = vpop.eup %1349 }
 0x689   :  { %v952_v63 = vadd.f32 1.0, %v1350_v62 }
 0x68b   :  { %1351 = vrcp.f32 %v952_v63 }
 0x698   :  { %v1352_v1 = vpop.eup %1351 }
 0x699   :  { %955 = vst [vmem:[#allocation8] sm:$0xff] %v1352_v1 }
 0x69a   :  { %1444 = shalt.err (!%p1441_p10)
}
 0x69b   :  { %965 = dma.vmem_to_hbm [thread:$0]  %s963_s11, 128, %s1591_s3, [#allocation4]  }
 0x69c   :  { %1457 = dma.done.wait [#allocation4], 128  }
 0x69d   :  { %1458 = vsyncadd [#allocation4], 4294967168 }
 0x69e   :  { %1459 = dma.done.wait [#allocation10], 128  }
 0x69f   :  { %1460 = vsyncadd [#allocation10], 4294967168 }
 0x6a0   :  { %982 = vsyncpa [#allocation3], 1 }
 0x6a1   :  { %983 = vsyncpa [#allocation6], 1 }
 0x6a2   :  { %984 = vsyncpa [#allocation4], 1 }
 0x6a3   :  { %985 = vsyncpa [#allocation10], 1 }

</bundles_post_ra>
